<compile_context>
chip_gen: v7x
topology: tpu7x:2x2x1
jax: 0.10.0
libtpu: 0.0.40
codegen_flags: <defaults>
</compile_context>

<pallas_src>
import jax
import jax.numpy as jnp
from jax.experimental import pallas as pl
from jax.experimental.pallas import tpu as pltpu


def _temporal_attention_kernel(x_ref, w1_ref, b1_ref, w2_ref, b2_ref,
                               rep_ref, pool_ref, out_ref):
    # x_ref:    (tb, T*H)   one lane-dense row per batch element (time-major groups of H)
    # w1_ref:   (T*H, T*H2) block-diagonal Linear1 weight
    # b1_ref:   (1, T*H2)   Linear1 bias tiled T times
    # w2_ref:   (T*H2, T)   block-diagonal Linear2 weight (out_features == 1 per time step)
    # b2_ref:   (1, 1)      Linear2 bias
    # rep_ref:  (T, T*H)    replicates each softmax weight across its H feature lanes
    # pool_ref: (T*H, H)    sums the T weighted feature groups back down to H lanes
    # out_ref:  (tb, out_w) lanes [0:H) = context, [H:H+T) = attention weights, rest zero
    t_dim = w2_ref.shape[-1]
    h_dim = pool_ref.shape[-1]

    x = x_ref[...].astype(jnp.float32)                                     # (tb, T*H)

    # Linear1 + tanh: one lane-dense MXU matmul (K=T*H, N=T*H2); tanh on the EUP.
    h = jnp.tanh(jnp.dot(x, w1_ref[...], preferred_element_type=jnp.float32)
                 + b1_ref[...])                                            # (tb, T*H2)

    # Linear2: scores come out directly lane-shaped (tb, T).
    s = jnp.dot(h, w2_ref[...], preferred_element_type=jnp.float32) + b2_ref[...]

    # softmax over time (lane axis); exact divide so the emitted weights sum to 1.
    m = jnp.max(s, axis=-1, keepdims=True)
    e = jnp.exp(s - m)
    w = e / jnp.sum(e, axis=-1, keepdims=True)                             # (tb, T)

    # context = sum_t w[:, t] * x[:, t*H:(t+1)*H], kept lane-dense via two small matmuls
    # (no in-kernel reshapes / transposes).
    w_rep = jnp.dot(w, rep_ref[...], preferred_element_type=jnp.float32)   # (tb, T*H)
    ctx = jnp.dot(x * w_rep, pool_ref[...],
                  preferred_element_type=jnp.float32)                      # (tb, H)

    pad = out_ref.shape[-1] - (h_dim + t_dim)
    parts = [ctx, w]
    if pad > 0:
        parts.append(jnp.zeros((ctx.shape[0], pad), jnp.float32))
    out_ref[...] = jnp.concatenate(parts, axis=-1).astype(out_ref.dtype)


def temporal_attention(hidden_states, w1, b1, w2, b2, *,
                       block_batch=None, stream_dtype=None):
    """hidden_states: (B, T, H). Returns (context (B, H), weights (B, T, 1))."""
    B, T, H = hidden_states.shape
    H2 = w1.shape[-1]
    assert w1.shape == (H, H2)
    f32 = jnp.float32

    w1 = jnp.asarray(w1, f32)
    b1 = jnp.asarray(b1, f32).reshape(1, H2)
    w2 = jnp.asarray(w2, f32).reshape(H2)
    b2 = jnp.asarray(b2, f32).reshape(1, 1)

    # ---- tiny constant operators, built once (all exact elementwise, no matmuls) -------
    eye_t = jnp.eye(T, dtype=f32)
    # Block-diagonal Linear1: (T*H, T*H2) so one MXU matmul handles all T time steps.
    w1_bd = (eye_t[:, None, :, None] * w1[None, :, None, :]).reshape(T * H, T * H2)
    b1_t = jnp.tile(b1, (1, T))                                         # (1, T*H2)
    # Block-diagonal Linear2: (T*H2, T) -> scores as a lane-shaped (tb, T) tile.
    w2_bd = (eye_t[:, None, :] * w2[None, :, None]).reshape(T * H2, T)
    # Weight replication (T, T*H) and feature pooling (T*H, H) for the weighted sum.
    rep = jnp.repeat(eye_t, H, axis=1)                                  # (T, T*H)
    pool = jnp.tile(jnp.eye(H, dtype=f32), (T, 1))                      # (T*H, H)

    # ---- block sizing (VMEM / generation aware) -----------------------------------------
    x_dtype = f32 if stream_dtype is None else jnp.dtype(stream_dtype)
    row_elems = T * H
    lane_row = -(-row_elems // 128) * 128                               # lane-padded row
    row_bytes = lane_row * jnp.dtype(x_dtype).itemsize

    try:
        vmem_bytes = int(pltpu.get_tpu_info().vmem_capacity_bytes)
    except Exception:
        vmem_bytes = 64 * 1024 * 1024                                   # v7x-safe fallback

    if block_batch is None:
        # ~4 MiB of x per step: amortizes the ~0.35us/step pipeline overhead while leaving
        # room for double-buffered I/O + matmul intermediates inside v7x's 64 MiB VMEM.
        block_bytes = max(1 << 20, min(4 << 20, vmem_bytes // 16))
        block_batch = max(8, block_bytes // row_bytes)

    # NOTE: a user-supplied block_batch < 8 is rounded up to 8 (sublane alignment).
    tb = max(8, min(int(block_batch), -(-B // 8) * 8))
    tb = (tb // 8) * 8
    n_blocks = -(-B // tb)
    if n_blocks == 1 and tb >= 16:
        # prefer a >=2-step "parallel" grid so both v7x TensorCores get work
        tb = -(-(tb // 2) // 8) * 8
        n_blocks = -(-B // tb)
    b_pad = n_blocks * tb

    # ---- lane-dense input layout --------------------------------------------------------
    x = jnp.asarray(hidden_states, f32)
    if b_pad != B:
        x = jnp.concatenate([x, jnp.zeros((b_pad - B, T, H), f32)], axis=0)
    x_dense = x.reshape(b_pad, T * H)                 # contiguous reshape: free plumbing
    if stream_dtype is not None:
        x_dense = x_dense.astype(x_dtype)             # optional bf16 streaming (v6e/v7x)

    out_w = max(128, -(-(H + T) // 128) * 128)        # single lane-dense output slab

    grid = (b_pad // tb,)
    grid_spec = pltpu.PrefetchScalarGridSpec(
        num_scalar_prefetch=0,
        grid=grid,
        in_specs=[
            pl.BlockSpec((tb, row_elems), lambda i: (i, 0)),      # x (lane-dense rows)
            # parameters: constant index_map -> VMEM resident across grid steps
            pl.BlockSpec((T * H, T * H2), lambda i: (0, 0)),      # W1 block-diagonal
            pl.BlockSpec((1, T * H2), lambda i: (0, 0)),          # b1 tiled
            pl.BlockSpec((T * H2, T), lambda i: (0, 0)),          # W2 block-diagonal
            pl.BlockSpec((1, 1), lambda i: (0, 0)),               # b2
            pl.BlockSpec((T, T * H), lambda i: (0, 0)),           # rep
            pl.BlockSpec((T * H, H), lambda i: (0, 0)),           # pool
        ],
        out_specs=pl.BlockSpec((tb, out_w), lambda i: (i, 0)),    # packed ctx|weights slab
    )

    x_block_bytes = tb * row_bytes
    param_bytes = 4 * (w1_bd.size + b1_t.size + w2_bd.size + 1 + rep.size + pool.size)
    # generous estimate: double-buffered I/O + full-tile matmul intermediates + headroom
    vmem_need = 8 * x_block_bytes + 2 * param_bytes + (4 << 20)
    vmem_limit = int(min(max(vmem_need, 32 << 20), (3 * vmem_bytes) // 4))

    out = pl.pallas_call(
        _temporal_attention_kernel,
        out_shape=jax.ShapeDtypeStruct((b_pad, out_w), f32),
        grid_spec=grid_spec,
        compiler_params=pltpu.CompilerParams(
            dimension_semantics=("parallel",),        # lets v7x's 2 TensorCores split batch
            vmem_limit_bytes=vmem_limit),
    )(x_dense, w1_bd, b1_t, w2_bd, b2, rep, pool)

    ctx = out[:B, :H].astype(hidden_states.dtype)
    wts = out[:B, H:H + T].astype(hidden_states.dtype)[:, :, None]   # PyTorch (B, T, 1)
    return ctx, wts


def _reference(hidden_states, w1, b1, w2, b2):
    """Pure-JAX reference mirroring the PyTorch module (full f32 matmul precision)."""
    with jax.default_matmul_precision("float32"):
        h = jnp.tanh(hidden_states @ w1 + b1.reshape(-1))             # (B, T, H2)
        s = h @ w2 + b2.reshape(-1)                                    # (B, T, 1)
    wts = jax.nn.softmax(s, axis=1)                                    # softmax over time
    ctx = jnp.sum(hidden_states * wts, axis=1)                         # (B, H)
    return ctx, wts


if __name__ == "__main__":
    B, T, H = 2, 8, 32
    H2 = H // 2

    key = jax.random.PRNGKey(0)
    kx, k1, k2, k3, k4 = jax.random.split(key, 5)

    hidden_states = jax.random.normal(kx, (B, T, H), dtype=jnp.float32)
    w1 = jax.random.normal(k1, (H, H2), dtype=jnp.float32) * 0.1
    b1 = jax.random.normal(k2, (1, H2), dtype=jnp.float32) * 0.1
    w2 = jax.random.normal(k3, (H2, 1), dtype=jnp.float32) * 0.1
    b2 = jax.random.normal(k4, (1, 1), dtype=jnp.float32) * 0.1

    ctx, wts = temporal_attention(hidden_states, w1, b1, w2, b2)
    jax.block_until_ready((ctx, wts))

    ctx_ref, wts_ref = _reference(hidden_states, w1, b1, w2, b2)
    assert ctx.shape == (B, H) and wts.shape == (B, T, 1)
    assert jnp.allclose(ctx, ctx_ref, atol=2e-3, rtol=2e-3), \
        float(jnp.max(jnp.abs(ctx - ctx_ref)))
    assert jnp.allclose(wts, wts_ref, atol=2e-3, rtol=2e-3), \
        float(jnp.max(jnp.abs(wts - wts_ref)))

    # Second case: exercises batch padding + a multi-step "parallel" grid.
    B2 = 13
    hs2 = jax.random.normal(jax.random.PRNGKey(1), (B2, T, H), dtype=jnp.float32)
    ctx2, wts2 = temporal_attention(hs2, w1, b1, w2, b2, block_batch=8)
    jax.block_until_ready((ctx2, wts2))
    ctx2_ref, wts2_ref = _reference(hs2, w1, b1, w2, b2)
    assert ctx2.shape == (B2, H) and wts2.shape == (B2, T, 1)
    assert jnp.allclose(ctx2, ctx2_ref, atol=2e-3, rtol=2e-3), \
        float(jnp.max(jnp.abs(ctx2 - ctx2_ref)))
    assert jnp.allclose(wts2, wts2_ref, atol=2e-3, rtol=2e-3), \
        float(jnp.max(jnp.abs(wts2 - wts2_ref)))

    print("KERNEL_OK")
</pallas_src>

<mosaic_0001>
module attributes {stable_mosaic.version = 11 : i64} {
  func.func @_temporal_attention_kernel(%arg0: i32, %arg1: memref<8x256xf32, #tpu.memory_space<vmem>>, %arg2: memref<256x128xf32, #tpu.memory_space<vmem>>, %arg3: memref<1x128xf32, #tpu.memory_space<vmem>>, %arg4: memref<128x8xf32, #tpu.memory_space<vmem>>, %arg5: memref<1x1xf32, #tpu.memory_space<vmem>>, %arg6: memref<8x256xf32, #tpu.memory_space<vmem>>, %arg7: memref<256x32xf32, #tpu.memory_space<vmem>>, %arg8: memref<8x128xf32, #tpu.memory_space<vmem>>) attributes {dimension_semantics = [#tpu.dimension_semantics<parallel>], iteration_bounds = array<i64: 1>, scalar_prefetch = 0 : i64, scratch_operands = 0 : i64, tpu.core_type = #tpu.core_type<tc>, window_params = [{transform_indices = @transform_0, window_bounds = array<i64: 8, 256>}, {pipeline_mode = #tpu.pipeline_mode<synchronous>, transform_indices = @transform_1, window_bounds = array<i64: 256, 128>}, {pipeline_mode = #tpu.pipeline_mode<synchronous>, transform_indices = @transform_2, window_bounds = array<i64: 1, 128>}, {pipeline_mode = #tpu.pipeline_mode<synchronous>, transform_indices = @transform_3, window_bounds = array<i64: 128, 8>}, {pipeline_mode = #tpu.pipeline_mode<synchronous>, transform_indices = @transform_4, window_bounds = array<i64: 1, 1>}, {pipeline_mode = #tpu.pipeline_mode<synchronous>, transform_indices = @transform_5, window_bounds = array<i64: 8, 256>}, {pipeline_mode = #tpu.pipeline_mode<synchronous>, transform_indices = @transform_6, window_bounds = array<i64: 256, 32>}, {transform_indices = @transform_7, window_bounds = array<i64: 8, 128>}]} {
    %c0 = arith.constant 0 : index
    %c0_0 = arith.constant 0 : index
    %0 = vector.load %arg1[%c0, %c0_0] : memref<8x256xf32, #tpu.memory_space<vmem>>, vector<8x256xf32>
    %c0_1 = arith.constant 0 : index
    %c0_2 = arith.constant 0 : index
    %1 = vector.load %arg2[%c0_1, %c0_2] : memref<256x128xf32, #tpu.memory_space<vmem>>, vector<256x128xf32>
    %cst = arith.constant dense<0.000000e+00> : vector<8x128xf32>
    %2 = tpu.matmul %0, %1, %cst {dimension_numbers = #tpu.dot_dimension_numbers<[1], [0], [0], [1], [0, 0, 1, 1], [], []>} : vector<8x256xf32>, vector<256x128xf32>, vector<8x128xf32> -> vector<8x128xf32>
    %c0_3 = arith.constant 0 : index
    %c0_4 = arith.constant 0 : index
    %3 = vector.load %arg3[%c0_3, %c0_4] : memref<1x128xf32, #tpu.memory_space<vmem>>, vector<1x128xf32>
    %4 = vector.broadcast %3 : vector<1x128xf32> to vector<8x128xf32>
    %5 = arith.addf %2, %4 : vector<8x128xf32>
    %6 = math.tanh %5 : vector<8x128xf32>
    %c0_5 = arith.constant 0 : index
    %c0_6 = arith.constant 0 : index
    %7 = vector.load %arg4[%c0_5, %c0_6] : memref<128x8xf32, #tpu.memory_space<vmem>>, vector<128x8xf32>
    %cst_7 = arith.constant dense<0.000000e+00> : vector<8x8xf32>
    %8 = tpu.matmul %6, %7, %cst_7 {dimension_numbers = #tpu.dot_dimension_numbers<[1], [0], [0], [1], [0, 0, 1, 1], [], []>} : vector<8x128xf32>, vector<128x8xf32>, vector<8x8xf32> -> vector<8x8xf32>
    %c0_8 = arith.constant 0 : index
    %c0_9 = arith.constant 0 : index
    %9 = vector.load %arg5[%c0_8, %c0_9] : memref<1x1xf32, #tpu.memory_space<vmem>>, vector<1x1xf32>
    %10 = vector.broadcast %9 : vector<1x1xf32> to vector<8x8xf32>
    %11 = arith.addf %8, %10 : vector<8x8xf32>
    %cst_10 = arith.constant dense<0xFF800000> : vector<8xf32>
    %12 = vector.multi_reduction <maximumf>, %11, %cst_10 [1] : vector<8x8xf32> to vector<8xf32>
    %13 = vector.shape_cast %12 : vector<8xf32> to vector<8x1xf32>
    %14 = vector.broadcast %13 : vector<8x1xf32> to vector<8x8xf32>
    %15 = arith.subf %11, %14 : vector<8x8xf32>
    %16 = math.exp %15 : vector<8x8xf32>
    %cst_11 = arith.constant dense<0.000000e+00> : vector<8xf32>
    %17 = vector.multi_reduction <add>, %16, %cst_11 [1] : vector<8x8xf32> to vector<8xf32>
    %18 = vector.shape_cast %17 : vector<8xf32> to vector<8x1xf32>
    %19 = vector.broadcast %18 : vector<8x1xf32> to vector<8x8xf32>
    %20 = arith.divf %16, %19 : vector<8x8xf32>
    %c0_12 = arith.constant 0 : index
    %c0_13 = arith.constant 0 : index
    %21 = vector.load %arg6[%c0_12, %c0_13] : memref<8x256xf32, #tpu.memory_space<vmem>>, vector<8x256xf32>
    %cst_14 = arith.constant dense<0.000000e+00> : vector<8x256xf32>
    %22 = tpu.matmul %20, %21, %cst_14 {dimension_numbers = #tpu.dot_dimension_numbers<[1], [0], [0], [1], [0, 0, 1, 1], [], []>} : vector<8x8xf32>, vector<8x256xf32>, vector<8x256xf32> -> vector<8x256xf32>
    %23 = arith.mulf %0, %22 : vector<8x256xf32>
    %c0_15 = arith.constant 0 : index
    %c0_16 = arith.constant 0 : index
    %24 = vector.load %arg7[%c0_15, %c0_16] : memref<256x32xf32, #tpu.memory_space<vmem>>, vector<256x32xf32>
    %cst_17 = arith.constant dense<0.000000e+00> : vector<8x32xf32>
    %25 = tpu.matmul %23, %24, %cst_17 {dimension_numbers = #tpu.dot_dimension_numbers<[1], [0], [0], [1], [0, 0, 1, 1], [], []>} : vector<8x256xf32>, vector<256x32xf32>, vector<8x32xf32> -> vector<8x32xf32>
    %cst_18 = arith.constant 0.000000e+00 : f32
    %26 = vector.broadcast %cst_18 : f32 to vector<8x88xf32>
    %27 = tpu.concatenate %25, %20, %26 in 1 : vector<8x32xf32>, vector<8x8xf32>, vector<8x88xf32> -> vector<8x128xf32>
    %c0_19 = arith.constant 0 : index
    %c0_20 = arith.constant 0 : index
    %28 = vector.load %arg8[%c0_19, %c0_20] : memref<8x128xf32, #tpu.memory_space<vmem>>, vector<8x128xf32>
    tpu.vector_store %arg8[%c0_19, %c0_20], %27 {strides = array<i32>} : memref<8x128xf32, #tpu.memory_space<vmem>>, vector<8x128xf32>,
    return
  }
  func.func @transform_0(%arg0: i32) -> (i32, i32) {
    %c0_i32 = arith.constant 0 : i32
    %c0_i32_0 = arith.constant 0 : i32
    return %arg0, %c0_i32 : i32, i32
  }
  func.func @transform_1(%arg0: i32) -> (i32, i32) {
    %c0_i32 = arith.constant 0 : i32
    %c0_i32_0 = arith.constant 0 : i32
    %c0_i32_1 = arith.constant 0 : i32
    return %c0_i32, %c0_i32_0 : i32, i32
  }
  func.func @transform_2(%arg0: i32) -> (i32, i32) {
    %c0_i32 = arith.constant 0 : i32
    %c0_i32_0 = arith.constant 0 : i32
    %c0_i32_1 = arith.constant 0 : i32
    return %c0_i32, %c0_i32_0 : i32, i32
  }
  func.func @transform_3(%arg0: i32) -> (i32, i32) {
    %c0_i32 = arith.constant 0 : i32
    %c0_i32_0 = arith.constant 0 : i32
    %c0_i32_1 = arith.constant 0 : i32
    return %c0_i32, %c0_i32_0 : i32, i32
  }
  func.func @transform_4(%arg0: i32) -> (i32, i32) {
    %c0_i32 = arith.constant 0 : i32
    %c0_i32_0 = arith.constant 0 : i32
    %c0_i32_1 = arith.constant 0 : i32
    return %c0_i32, %c0_i32_0 : i32, i32
  }
  func.func @transform_5(%arg0: i32) -> (i32, i32) {
    %c0_i32 = arith.constant 0 : i32
    %c0_i32_0 = arith.constant 0 : i32
    %c0_i32_1 = arith.constant 0 : i32
    return %c0_i32, %c0_i32_0 : i32, i32
  }
  func.func @transform_6(%arg0: i32) -> (i32, i32) {
    %c0_i32 = arith.constant 0 : i32
    %c0_i32_0 = arith.constant 0 : i32
    %c0_i32_1 = arith.constant 0 : i32
    return %c0_i32, %c0_i32_0 : i32, i32
  }
  func.func @transform_7(%arg0: i32) -> (i32, i32) {
    %c0_i32 = arith.constant 0 : i32
    %c0_i32_0 = arith.constant 0 : i32
    return %arg0, %c0_i32 : i32, i32
  }
}

</mosaic_0001>

<bundles_post_ra>
// kernel: tpu_custom_call.1
= control target key start
LH: loop header
LB: loop body
LE: loop exit
PB: predicated region body
PF: predicated region fallthrough
CT: control target
= control target key end

     0   :  { %s1036_s0 = inlined_call_operand.vmem [shape: f32[8,256], index: 0, kind: input, shape index: {}]   ;;  %s1037_s1 = inlined_call_operand.vmem [shape: f32[256,128], index: 1, kind: input, shape index: {}]   ;;  %s1038_s2 = inlined_call_operand.vmem [shape: f32[1,128], index: 2, kind: input, shape index: {}]   ;;  %s1039_s3 = inlined_call_operand.vmem [shape: f32[128,8], index: 3, kind: input, shape index: {}]   ;;  %s1040_s4 = inlined_call_operand.<no memory space> [shape: f32[1,1], index: 4, kind: input, shape index: {}]   ;;  %s1041_s5 = inlined_call_operand.vmem [shape: f32[8,256], index: 5, kind: input, shape index: {}]   ;;  %s1042_s6 = inlined_call_operand.vmem [shape: f32[256,32], index: 6, kind: input, shape index: {}]   ;;  %s1043_s7 = inlined_call_operand.hbm [shape: f32[8,128], index: 7, kind: output, shape index: {}]  }
   0x1   :  { %v12_v0 = vstv %s1040_s4 }
   0x2   :  { %13 = vst [vmem:[#allocation2] sm:$0x1] %v12_v0 }
   0x3   :  { %v47_v1 = vld [vmem:[%s1037_s1 + $0x80] sm:$0xff]  ;;  %v48_v2 = vld [vmem:[%s1037_s1 + $0x88] sm:$0xff]  ;;  %v49_v6 = vld [vmem:[%s1037_s1 + $0x90] sm:$0xff]  ;;  %v701_v8 = vmov 0.0|0.0  }
   0x4   :  { %v31_v3 = vld [vmem:[%s1037_s1] sm:$0xff]  ;;  %v576_v4 = vpack.c.bf16 %v48_v2, %v47_v1  ;;  %v32_v5 = vld [vmem:[%s1037_s1 + $0x8] sm:$0xff]  ;;  %v50_v7 = vld [vmem:[%s1037_s1 + $0x98] sm:$0xff]  ;;  %608 = vmatprep.subr.bf16.mxu1 %v701_v8 }
   0x5   :  { %v578_v9 = vpack.c.bf16 %v32_v5, %v31_v3  ;;  %v580_v10 = vpack.c.bf16 %v50_v7, %v49_v6  ;;  %v33_v11 = vld [vmem:[%s1037_s1 + $0x10] sm:$0xff]  ;;  %v34_v12 = vld [vmem:[%s1037_s1 + $0x18] sm:$0xff]  ;;  %v51_v13 = vld [vmem:[%s1037_s1 + $0xa0] sm:$0xff] }
   0x6   :  { %577 = vmatprep.subr.bf16.mxu0 %v576_v4  ;;  %v52_v14 = vld [vmem:[%s1037_s1 + $0xa8] sm:$0xff]  ;;  %v582_v15 = vpack.c.bf16 %v34_v12, %v33_v11  ;;  %v35_v17 = vld [vmem:[%s1037_s1 + $0x20] sm:$0xff]  ;;  %v53_v19 = vld [vmem:[%s1037_s1 + $0xb0] sm:$0xff] }
   0x7   :  { %579 = vmatpush3.bf16.msra.mxu0 %v578_v9  ;;  %v584_v16 = vpack.c.bf16 %v52_v14, %v51_v13  ;;  %v36_v18 = vld [vmem:[%s1037_s1 + $0x28] sm:$0xff]  ;;  %v54_v20 = vld [vmem:[%s1037_s1 + $0xb8] sm:$0xff]  ;;  %v37_v23 = vld [vmem:[%s1037_s1 + $0x30] sm:$0xff] }
   0x8   :  { %581 = vmatprep.subr.bf16.mxu0 %v580_v10  ;;  %v586_v21 = vpack.c.bf16 %v36_v18, %v35_v17  ;;  %v588_v22 = vpack.c.bf16 %v54_v20, %v53_v19  ;;  %v38_v24 = vld [vmem:[%s1037_s1 + $0x38] sm:$0xff]  ;;  %v55_v25 = vld [vmem:[%s1037_s1 + $0xc0] sm:$0xff]  ;;  %v56_v26 = vld [vmem:[%s1037_s1 + $0xc8] sm:$0xff] }
   0x9   :  { %v808_v27 = vld [vmem:[%s1036_s0 + $0x8] sm:$0xff]  ;;  %v141_v28 = vld [vmem:[%s1039_s3] sm:$0xff]  ;;  %v590_v30 = vpack.c.bf16 %v38_v24, %v37_v23  ;;  %v143_v32 = vld [vmem:[%s1039_s3 + $0x10] sm:$0xff]  ;;  %v592_v34 = vpack.c.bf16 %v56_v26, %v55_v25 }
   0xa   :  { %134 = vmatprep.mubr.f32.mxu0 %v808_v27  ;;  %v142_v29 = vld [vmem:[%s1039_s3 + $0x8] sm:$0xff]  ;;  %v144_v33 = vld [vmem:[%s1039_s3 + $0x18] sm:$0xff]  ;;  %v39_v35 = vld [vmem:[%s1037_s1 + $0x40] sm:$0xff] }
   0xb   :  { %583 = vmatpush3.bf16.msra.mxu0 %v582_v15  ;;  %v609_v31 = vpack.c.bf16 %v142_v29, %v141_v28  ;;  %v40_v36 = vld [vmem:[%s1037_s1 + $0x48] sm:$0xff]  ;;  %v57_v37 = vld [vmem:[%s1037_s1 + $0xd0] sm:$0xff]  ;;  %v58_v38 = vld [vmem:[%s1037_s1 + $0xd8] sm:$0xff]  ;;  %v612_v39 = vpack.c.bf16 %v144_v33, %v143_v32 }
   0xc   :  { %585 = vmatprep.subr.bf16.mxu0 %v584_v16 }
   0xd   :  { %610 = vmatpush3.bf16.msra.mxu1 %v609_v31 }
   0xf   :  { %587 = vmatpush3.bf16.msra.mxu0 %v586_v21 }
  0x10   :  { %589 = vmatprep.subr.bf16.mxu0 %v588_v22 }
  0x11   :  { %14 = vsyncpa [#allocation4], 0  ;;  %611 = vmatprep.subr.bf16.mxu1 %v701_v8  ;;  %v145_v40 = vld [vmem:[%s1039_s3 + $0x20] sm:$0xff]  ;;  %v146_v41 = vld [vmem:[%s1039_s3 + $0x28] sm:$0xff]  ;;  %v594_v42 = vpack.c.bf16 %v40_v36, %v39_v35  ;;  %v596_v43 = vpack.c.bf16 %v58_v38, %v57_v37  ;;  %vm702_vm0 = vmmov 0   ;;  %v703_v12 = vmov 0.0  }
  0x12   :  { %v41_v44 = vld [vmem:[%s1037_s1 + $0x50] sm:$0xff]  ;;  %v42_v45 = vld [vmem:[%s1037_s1 + $0x58] sm:$0xff]  ;;  %v59_v46 = vld [vmem:[%s1037_s1 + $0xe0] sm:$0xff]  ;;  %613 = vmatpush3.bf16.msra.mxu1 %v612_v39  ;;  %v615_v48 = vpack.c.bf16 %v146_v41, %v145_v40  ;;  %573 = vmatprep.mubr.msk.f32.mxu1 %vm702_vm0, %v703_v12  ;;  %v704_v15 = vmov 0   ;;  %vm237_vm1 = vcmask 64512   ;;  %s705_s17 = smov 32  }
  0x13   :  { %591 = vmatpush3.bf16.msra.mxu0 %v590_v30  ;;  %v60_v47 = vld [vmem:[%s1037_s1 + $0xe8] sm:$0xff]  ;;  %614 = vmatprep.subr.bf16.mxu1 %v701_v8  ;;  %v147_v49 = vld [vmem:[%s1039_s3 + $0x30] sm:$0xff]  ;;  %v148_v50 = vld [vmem:[%s1039_s3 + $0x38] sm:$0xff]  ;;  %v598_v51 = vpack.c.bf16 %v42_v45, %v41_v44  ;;  %vm432_vm2 = vcmask 261120   ;;  %s706_s15 = smov [#allocation3]   ;;  %vm434_vm3 = vcmask 326656  }
  0x14   :  { %593 = vmatprep.subr.bf16.mxu0 %v592_v34  ;;  %v600_v52 = vpack.c.bf16 %v60_v47, %v59_v46  ;;  %v43_v53 = vld [vmem:[%s1037_s1 + $0x60] sm:$0xff]  ;;  %v44_v54 = vld [vmem:[%s1037_s1 + $0x68] sm:$0xff]  ;;  %v61_v55 = vld [vmem:[%s1037_s1 + $0xf0] sm:$0xff]  ;;  %v618_v57 = vpack.c.bf16 %v148_v50, %v147_v49  ;;  %670 = vset.pattern.permute.xlu0 %v704_v15 }
  0x15   :  { %v62_v56 = vld [vmem:[%s1037_s1 + $0xf8] sm:$0xff]  ;;  %v602_v58 = vpack.c.bf16 %v44_v54, %v43_v53  ;;  %v45_v60 = vld [vmem:[%s1037_s1 + $0x70] sm:$0xff]  ;;  %v884_v63 = vld [vmem:[%s1036_s0] sm:$0xff] }
  0x16   :  { %616 = vmatpush3.bf16.msra.mxu1 %v615_v48  ;;  %v604_v59 = vpack.c.bf16 %v62_v56, %v61_v55  ;;  %v46_v61 = vld [vmem:[%s1037_s1 + $0x78] sm:$0xff]  ;;  %v149_v0 = vld [vmem:[%s1039_s3 + $0x40] sm:$0xff]  ;;  %v150_v1 = vld [vmem:[%s1039_s3 + $0x48] sm:$0xff] }
  0x17   :  { %595 = vmatpush3.bf16.msra.mxu0 %v594_v42  ;;  %617 = vmatprep.subr.bf16.mxu1 %v701_v8  ;;  %v606_v62 = vpack.c.bf16 %v46_v61, %v45_v60  ;;  %v621_v2 = vpack.c.bf16 %v150_v1, %v149_v0  ;;  %v151_v3 = vld [vmem:[%s1039_s3 + $0x50] sm:$0xff]  ;;  %v152_v4 = vld [vmem:[%s1039_s3 + $0x58] sm:$0xff]  ;;  %v153_v6 = vld [vmem:[%s1039_s3 + $0x60] sm:$0xff] }
  0x18   :  { %597 = vmatprep.subr.bf16.mxu0 %v596_v43  ;;  %v624_v5 = vpack.c.bf16 %v152_v4, %v151_v3  ;;  %v154_v7 = vld [vmem:[%s1039_s3 + $0x68] sm:$0xff]  ;;  %v155_v10 = vld [vmem:[%s1039_s3 + $0x70] sm:$0xff]  ;;  %v156_v11 = vld [vmem:[%s1039_s3 + $0x78] sm:$0xff] }
  0x19   :  { %v627_v9 = vpack.c.bf16 %v154_v7, %v153_v6  ;;  %v630_v13 = vpack.c.bf16 %v156_v11, %v155_v10  ;;  %v452_v14 = vld [vmem:[#allocation2] ss:$0 sm:$0xff]  ;;  %v250_v32 = vld [vmem:[%s1041_s5 + $0x8] sm:$0xff]  ;;  %v345_v40 = vld [vmem:[%s1042_s6 + $0x90] sm:$0xff] }
  0x1a   :  { %619 = vmatpush3.bf16.msra.mxu1 %v618_v57  ;;  %164 = vperm.xlu0 %670, %v452_v14   ;;  %v451_v17 = vld [vmem:[%s1038_s2] ss:$0 sm:$0xff]  ;;  %v344_v36 = vld [vmem:[%s1042_s6 + $0x88] sm:$0xff]  ;;  %v346_v41 = vld [vmem:[%s1042_s6 + $0x98] sm:$0xff] }
  0x1b   :  { %599 = vmatpush3.bf16.msra.mxu0 %v598_v51  ;;  %620 = vmatprep.subr.bf16.mxu1 %v701_v8  ;;  %v249_v33 = vld [vmem:[%s1041_s5] sm:$0xff]  ;;  %v328_v39 = vld [vmem:[%s1042_s6 + $0x8] sm:$0xff]  ;;  %v636_v43 = vpack.c.bf16 %v346_v41, %v345_v40  ;;  %v329_v44 = vld [vmem:[%s1042_s6 + $0x10] sm:$0xff]  ;;  %s443_s5 = sshll.u32 %s706_s15, 4  ;;  %s444_s5 = int_to_ptr.vmem [resolvable:$true] %s443_s5 }
  0x1c   :  { %601 = vmatprep.subr.bf16.mxu0 %v600_v52  ;;  %v343_v35 = vld [vmem:[%s1042_s6 + $0x80] sm:$0xff]  ;;  %v330_v45 = vld [vmem:[%s1042_s6 + $0x18] sm:$0xff]  ;;  %v348_v47 = vld [vmem:[%s1042_s6 + $0xa8] sm:$0xff]  ;;  %p682_p1 = scmp.lt.s32.totalorder %s444_s5, %s444_s5 }
  0x1d   :  { %v327_v37 = vld [vmem:[%s1042_s6] sm:$0xff]  ;;  %v632_v38 = vpack.c.bf16 %v344_v36, %v343_v35  ;;  %v638_v48 = vpack.c.bf16 %v330_v45, %v329_v44  ;;  %v332_v51 = vld [vmem:[%s1042_s6 + $0x28] sm:$0xff]  ;;  %v349_v52 = vld [vmem:[%s1042_s6 + $0xb0] sm:$0xff] }
  0x1e   :  { %622 = vmatpush3.bf16.msra.mxu1 %v621_v2  ;;  %v634_v42 = vpack.c.bf16 %v328_v39, %v327_v37  ;;  %v347_v46 = vld [vmem:[%s1042_s6 + $0xa0] sm:$0xff]  ;;  %v350_v53 = vld [vmem:[%s1042_s6 + $0xb8] sm:$0xff]  ;;  %v333_v56 = vld [vmem:[%s1042_s6 + $0x30] sm:$0xff] }
  0x1f   :  { %603 = vmatpush3.bf16.msra.mxu0 %v602_v58  ;;  %623 = vmatprep.subr.bf16.mxu1 %v701_v8  ;;  %v640_v49 = vpack.c.bf16 %v348_v47, %v347_v46  ;;  %v331_v50 = vld [vmem:[%s1042_s6 + $0x20] sm:$0xff]  ;;  %v644_v55 = vpack.c.bf16 %v350_v53, %v349_v52  ;;  %v334_v57 = vld [vmem:[%s1042_s6 + $0x38] sm:$0xff]  ;;  %v336_v2 = vld [vmem:[%s1042_s6 + $0x48] sm:$0xff] }
  0x20   :  { %605 = vmatprep.subr.bf16.mxu0 %v604_v59  ;;  %v642_v54 = vpack.c.bf16 %v332_v51, %v331_v50  ;;  %v351_v58 = vld [vmem:[%s1042_s6 + $0xc0] sm:$0xff]  ;;  %v352_v59 = vld [vmem:[%s1042_s6 + $0xc8] sm:$0xff]  ;;  %v353_v3 = vld [vmem:[%s1042_s6 + $0xd0] sm:$0xff] }
  0x21   :  { %v648_v0 = vpack.c.bf16 %v352_v59, %v351_v58  ;;  %v335_v1 = vld [vmem:[%s1042_s6 + $0x40] sm:$0xff]  ;;  %v354_v4 = vld [vmem:[%s1042_s6 + $0xd8] sm:$0xff]  ;;  %v337_v7 = vld [vmem:[%s1042_s6 + $0x50] sm:$0xff] }
  0x22   :  { %625 = vmatpush3.bf16.msra.mxu1 %v624_v5  ;;  %v650_v5 = vpack.c.bf16 %v336_v2, %v335_v1  ;;  %v652_v6 = vpack.c.bf16 %v354_v4, %v353_v3  ;;  %v355_v10 = vld [vmem:[%s1042_s6 + $0xe0] sm:$0xff]  ;;  %v356_v11 = vld [vmem:[%s1042_s6 + $0xe8] sm:$0xff] }
  0x23   :  { %607 = vmatpush3.bf16.msra.mxu0 %v606_v62  ;;  %626 = vmatprep.subr.bf16.mxu1 %v701_v8  ;;  %v646_v62 = vpack.c.bf16 %v334_v57, %v333_v56  ;;  %v339_v14 = vld [vmem:[%s1042_s6 + $0x60] sm:$0xff]  ;;  %v340_v15 = vld [vmem:[%s1042_s6 + $0x68] sm:$0xff] }
  0x24   :  { %254 = vmatprep.subr.mxu0 %v250_v32 }
  0x26   :  { %135 = vmatmul.mubr.f32.vlgmr.msra.gmra.mrb[0].mxu0 %v884_v63  ;;  %628 = vmatpush3.bf16.msra.mxu1 %v627_v9  ;;  %v338_v9 = vld [vmem:[%s1042_s6 + $0x58] sm:$0xff] }
  0x27   :  { %318 = vmatprep.mubr.f32.mxu0 %v703_v12  ;;  %629 = vmatprep.subr.bf16.mxu1 %v701_v8  ;;  %v654_v12 = vpack.c.bf16 %v338_v9, %v337_v7 }
  0x28   :  { %255 = vmatpush1.msra.mxu0 %v249_v33 }
  0x2a   :  { %631 = vmatpush3.bf16.msra.mxu1 %v630_v13  ;;  %v656_v13 = vpack.c.bf16 %v356_v11, %v355_v10 }
  0x2b   :  { %633 = vmatprep.subr.bf16.mxu1 %v632_v38 }
  0x99   :  { %v165_v22 = vpop.permute.xlu0 %164 }
  0xf9   :  { %v486_v16 = vpop.f32.mrb[0].mxu0 }
  0xfa   :  { %v487_v18 = vpop.f32.mrb[1].mxu0 }
  0xfb   :  { %v488_v19 = vadd.f32 %v487_v18, %v486_v16  ;;  %v658_v16 = vpack.c.bf16 %v340_v15, %v339_v14  ;;  %v358_v18 = vld [vmem:[%s1042_s6 + $0xf8] sm:$0xff] }
  0xfd   :  { %v137_v20 = vadd.f32 %v488_v19, %v451_v17  ;;  %v357_v17 = vld [vmem:[%s1042_s6 + $0xf0] sm:$0xff] }
  0xfe   :  { %v660_v19 = vpack.c.bf16 %v358_v18, %v357_v17 }
  0xff   :  { %671 = vtanh.f32 %v137_v20  ;;  %v341_v20 = vld [vmem:[%s1042_s6 + $0x70] sm:$0xff] }
 0x109   :  { %v672_v21 = vpop.eup %671 }
 0x10a   :  { %574 = vmatmul.mubr.f32.vlgmr.msra.gmra.mrb[0].mxu1 %v672_v21  ;;  %v342_v21 = vld [vmem:[%s1042_s6 + $0x78] sm:$0xff]  ;;  %s677_s6 = scalar_lea.vmem %s444_s5, 128 }
 0x10b   :  { %635 = vmatpush3.bf16.msra.mxu1 %v634_v42  ;;  %p678_p0 = scmp.ne.s32.totalorder %s444_s5, %s677_s6  ;;  %p683_p2 = scmp.lt.s32.totalorder %s677_s6, %s677_s6 }
 0x10c   :  { %637 = vmatprep.subr.bf16.mxu1 %v636_v43 }
 0x10d   :  { %p684_p3 = por %p683_p2, %p682_p1 }
 0x10f   :  { %639 = vmatpush3.bf16.msra.mxu1 %v638_v48  ;;  %p685_p4 = pnand %p684_p3, %p678_p0 }
 0x110   :  { %641 = vmatprep.subr.bf16.mxu1 %v640_v49 }
 0x113   :  { %643 = vmatpush3.bf16.msra.mxu1 %v642_v54 }
 0x114   :  { %645 = vmatprep.subr.bf16.mxu1 %v644_v55 }
 0x117   :  { %647 = vmatpush3.bf16.msra.mxu1 %v646_v62 }
 0x118   :  { %649 = vmatprep.subr.bf16.mxu1 %v648_v0 }
 0x11b   :  { %651 = vmatpush3.bf16.msra.mxu1 %v650_v5 }
 0x11c   :  { %653 = vmatprep.subr.bf16.mxu1 %v652_v6 }
 0x11f   :  { %655 = vmatpush3.bf16.msra.mxu1 %v654_v12 }
 0x120   :  { %657 = vmatprep.subr.bf16.mxu1 %v656_v13 }
 0x123   :  { %659 = vmatpush3.bf16.msra.mxu1 %v658_v16 }
 0x124   :  { %661 = vmatprep.subr.bf16.mxu1 %v660_v19 }
 0x1dd   :  { %v233_v23 = vpop.f32.mrb[0].mxu1 }
 0x1de   :  { %v234_v8 = vadd.f32 %v233_v23, %v165_v22  ;;  %v575_v24 = vpop.f32.mrb[1].mxu1  ;;  %v662_v22 = vpack.c.bf16 %v342_v21, %v341_v20 }
 0x1e0   :  { %v238_v25 = vsel %vm237_vm1, %v234_v8, -inf  ;;  %663 = vmatpush3.bf16.msra.mxu1 %v662_v22 }
 0x1e1   :  { %239 = vmax.xlane.f32.xlu0 %v238_v25 }
 0x26e   :  { %v240_v26 = vpop.xlane.xlu0 %239 }
 0x26f   :  { %v241_v28 = vsub.f32 %v234_v8, %v240_v26 }
 0x271   :  { %v242_v29 = vmul.f32 1.442695, %v241_v28 }
 0x273   :  { %673 = vpow2.f32 %v242_v29 }
 0x27d   :  { %v674_v30 = vpop.eup %673 }
 0x27e   :  { %v244_v31 = vsel %vm237_vm1, %v674_v30, 0.0 }
 0x27f   :  { %245 = vadd.xlane.f32.xlu1 %v244_v31 }
 0x30c   :  { %v246_v34 = vpop.xlane.xlu1 %245 }
 0x30d   :  { %675 = vrcp.f32 %v246_v34 }
 0x317   :  { %v676_v60 = vpop.eup %675 }
 0x318   :  { %v248_v61 = vmul.f32 %v676_v60, %v674_v30 }
 0x31a   :  { %429 = vrot.lane.b32.xlu1 %v248_v61, %s705_s17  ;;  %453 = vmatmul.mubr.msk.f32.vlgmr.msra.gmra.mrb[2].mxu0 %vm237_vm1, %v248_v61 }
 0x38c   :  { %v430_v30 = vpop.permute.xlu1 %429 }
 0x3ed   :  { %v320_v23 = vpop.f32.mrb[2].mxu0 }
 0x3ee   :  { %v322_v8 = vpop.f32.mrb[3].mxu0  ;;  %v325_v25 = vmul.f32 %v320_v23, %v884_v63 }
 0x3ef   :  { %v326_v24 = vmul.f32 %v322_v8, %v808_v27 }
 0x3f1   :  { %423 = vmatprep.mubr.f32.mxu1 %v326_v24 }
 0x3f2   :  { %424 = vmatmul.mubr.f32.vlgmr.msra.gmra.mrb[2].mxu1 %v325_v25 }
 0x4c5   :  { %v538_v26 = vpop.f32.mrb[2].mxu1 }
 0x4c6   :  { %v539_v28 = vpop.f32.mrb[3].mxu1 }
 0x4c7   :  { %v540_v29 = vadd.f32 %v539_v28, %v538_v26 }
 0x4c9   :  { %v433_v31 = vsel %vm432_vm2, %v540_v29, %v430_v30 }
 0x4ca   :  { %v435_v32 = vsel %vm434_vm3, %v433_v31, 0.0 }
 0x4cb   :  { %436 = vst [vmem:[#allocation3] sm:$0xff] %v435_v32 }
 0x4cc   :  { %688 = shalt.err (!%p685_p4)
}
 0x4cd   :  { %s689_s17 = scalar_lea.hbm %s1043_s7, 128 }
 0x4ce   :  { %p690_p5 = scmp.ne.s32.totalorder %s1043_s7, %s689_s17  ;;  %p693_p6 = scmp.lt.u32.totalorder %s689_s17, %s1043_s7 }
 0x4d0   :  { %p695_p7 = pnand %p693_p6, %p690_p5 }
 0x4d2   :  { %698 = shalt.err (!%p695_p7)
}
 0x4d3   :  { %446 = dma.vmem_to_hbm [thread:$0]  %s444_s5, 128, %s1043_s7, [#allocation4]  }
 0x4d4   :  { %699 = dma.done.wait [#allocation4], 128  }
 0x4d5   :  { %700 = vsyncadd [#allocation4], 4294967168 }
 0x4d6   :  { %450 = vsyncpa [#allocation4], 1 }

</bundles_post_ra>
